<compile_context>
chip_gen: v7x
topology: tpu7x:2x2x1
jax: 0.10.0
libtpu: 0.0.40
codegen_flags: <defaults>
</compile_context>

<pallas_src>
import functools
import math

import jax
import jax.numpy as jnp
from jax import lax
from jax.experimental import pallas as pl
from jax.experimental.pallas import tpu as pltpu


def _round_up(a: int, b: int) -> int:
    return ((a + b - 1) // b) * b


def _vmem_capacity_bytes() -> int:
    """Physical VMEM capacity; conservative (v7x-sized) fallback."""
    try:
        info = pltpu.get_tpu_info()
        cap = getattr(info, "vmem_capacity_bytes", None)
        if cap:
            return int(cap)
    except Exception:
        pass
    return 64 * 1024 * 1024


def _pick_tile_n(n: int, requested, vmem_cap: int) -> int:
    n8 = _round_up(max(int(n), 8), 8)
    if requested is not None:
        return max(8, _round_up(min(int(requested), n8), 8))
    small_vmem = vmem_cap < 100 * (1 << 20)          # v7x-class (64 MiB / 2 TCs)
    base = 1024 if small_vmem else 2048              # bigger tiles on v5e/v6e
    tile = min(base, n8)
    if small_vmem:
        # v7x has 2 TensorCores per chip: make sure the "parallel" grid has at
        # least 2 steps once N is large enough so both cores get work.
        tile = min(tile, _round_up(max(256, (n8 + 1) // 2), 8))
    return max(8, tile)


def _memory_block_kernel(x_ref, memt_ref, mem_ref, out_ref, *,
                         shrink_thres, valid_mem_dim, matmul_dtype):
    x = x_ref[...]                       # [tile_n, z_dim] f32 (pipelined)
    memt = memt_ref[...]                 # [z_dim, m_pad]  = mem.T / tem (resident)
    mem = mem_ref[...]                   # [m_pad, z_dim]  (resident)
    m_pad = memt.shape[1]

    # att = (x / tem) @ mem.T == x @ (mem.T / tem); f32 accumulation on MXU.
    att = jnp.dot(x.astype(matmul_dtype), memt,
                  preferred_element_type=jnp.float32)        # [tile_n, m_pad]

    # Zero-padded memory slots must not participate in softmax / L1 norm.
    if valid_mem_dim < m_pad:
        col = lax.broadcasted_iota(jnp.int32, att.shape, 1)
        att = jnp.where(col < valid_mem_dim, att, -jnp.inf)

    # Numerically stable softmax over the memory axis.  The approx EUP
    # reciprocal's per-row error is common to the whole row and is cancelled
    # by the exact L1 renormalization below.
    att_max = jnp.max(att, axis=1, keepdims=True)
    e = jnp.exp(att - att_max)
    att = e * pl.reciprocal(jnp.sum(e, axis=1, keepdims=True), approx=True)

    if shrink_thres > 0:
        lambd = jnp.float32(shrink_thres)
        eps = jnp.float32(1e-12)
        # hard_shrink_relu: relu(a-l) * a / (|a-l| + eps).  att >= 0 post
        # softmax, so wherever the numerator is nonzero |a-l| == relu(a-l);
        # where it is zero the result is zero regardless of the denominator.
        pos = jnp.maximum(att - lambd, 0.0)
        att = att * pos / (pos + eps)                 # exact divide (parity)
        # F.normalize(p=1): att >= 0 after the shrink, so no abs needed.
        l1 = jnp.sum(att, axis=1, keepdims=True)
        att = att / jnp.maximum(l1, eps)              # exact divide (parity)

    # output = att @ mem (padded att columns are 0 and padded mem rows are 0).
    out = jnp.dot(att.astype(matmul_dtype), mem,
                  preferred_element_type=jnp.float32)
    out_ref[...] = out.astype(out_ref.dtype)


def _memory_block_call(x, memt_scaled, mem_p, *, valid_mem_dim, shrink_thres,
                       matmul_dtype, tile_n=None):
    n, z_dim = x.shape
    m_pad = mem_p.shape[0]
    assert memt_scaled.shape == (z_dim, m_pad)

    vmem_cap = _vmem_capacity_bytes()
    tile = _pick_tile_n(n, tile_n, vmem_cap)
    grid = (pl.cdiv(n, tile),)

    mm_bytes = jnp.dtype(matmul_dtype).itemsize
    # x + out tiles (f32, double-buffered) + both resident mem copies
    # (conservatively counted double-buffered) + att intermediates headroom.
    vmem_est = (2 * 2 * tile * z_dim * 4
                + 2 * 2 * m_pad * z_dim * mm_bytes
                + 6 * tile * m_pad * 4)
    vmem_limit = int(min(max(2 * vmem_est, 16 * 1024 * 1024), vmem_cap // 2))

    cost = pl.CostEstimate(
        flops=4 * n * m_pad * z_dim,                    # two matmuls
        transcendentals=n * m_pad,                      # exp in softmax
        bytes_accessed=4 * 2 * n * z_dim + 2 * mm_bytes * m_pad * z_dim,
    )

    kernel = functools.partial(
        _memory_block_kernel,
        shrink_thres=float(shrink_thres),
        valid_mem_dim=int(valid_mem_dim),
        matmul_dtype=matmul_dtype,
    )

    return pl.pallas_call(
        kernel,
        out_shape=jax.ShapeDtypeStruct((n, z_dim), jnp.float32),
        grid=grid,
        in_specs=[
            pl.BlockSpec((tile, z_dim), lambda i: (i, 0)),    # x (pipelined)
            pl.BlockSpec((z_dim, m_pad), lambda i: (0, 0)),   # mem.T/tem (resident)
            pl.BlockSpec((m_pad, z_dim), lambda i: (0, 0)),   # mem       (resident)
        ],
        out_specs=pl.BlockSpec((tile, z_dim), lambda i: (i, 0)),
        compiler_params=pltpu.CompilerParams(
            dimension_semantics=("parallel",),
            vmem_limit_bytes=vmem_limit,
        ),
        cost_estimate=cost,
    )(x.astype(jnp.float32), memt_scaled, mem_p)


class MemoryBlockPallas:
    """Pallas TPU forward pass of MemoryBlock.

    mem is a constant buffer, so its padded copy and the pre-transposed,
    1/tem-pre-scaled copy are prepared exactly once at construction time
    (no per-call pad / transpose / rescale HBM traffic).
    """

    def __init__(self, mem, shrink_thres=0.005, tem=0.5,
                 matmul_dtype=jnp.float32):
        mem = jnp.asarray(mem, jnp.float32)
        self.mem_dim, self.z_dim = mem.shape
        self.shrink_thres = float(shrink_thres)
        self.tem = float(tem)
        self.matmul_dtype = matmul_dtype

        m_pad = _round_up(self.mem_dim, 128)     # keep 128 granularity (not 256)
        self.m_pad = m_pad
        mem_p = jnp.pad(mem, ((0, m_pad - self.mem_dim), (0, 0)))
        self.mem_p = mem_p.astype(matmul_dtype)
        self.memt_scaled = (mem_p.T * jnp.float32(1.0 / self.tem)).astype(matmul_dtype)

    def __call__(self, x, tile_n=None):
        return _memory_block_call(
            x, self.memt_scaled, self.mem_p,
            valid_mem_dim=self.mem_dim,
            shrink_thres=self.shrink_thres,
            matmul_dtype=self.matmul_dtype,
            tile_n=tile_n,
        )

    # TODO(synk): update_mem / mem_ptr ring-buffer writes are training-time
    # state mutation outside forward(); implement with plain JAX index updates
    # if needed, not as a kernel.


def _reference_forward(x, mem, *, tem=0.5, shrink_thres=0.005):
    """Pure-JAX f32 reference mirroring the PyTorch module."""
    att = x @ mem.T
    att = jax.nn.softmax(att / tem, axis=1)
    if shrink_thres > 0:
        shifted = att - shrink_thres
        att = jnp.maximum(shifted, 0.0) * att / (jnp.abs(shifted) + 1e-12)
        l1 = jnp.sum(jnp.abs(att), axis=1, keepdims=True)
        att = att / jnp.maximum(l1, 1e-12)
    return att @ mem


if __name__ == "__main__":
    tem, shrink_thres = 0.5, 0.005
    key = jax.random.PRNGKey(0)
    k_mem, k_x, k_x2, k_mem3, k_x3 = jax.random.split(key, 5)

    # Module-consistent small shapes: mem_dim=64 memory slots, z_dim=32, N=8.
    mem_dim, z_dim, n = 64, 32, 8
    stdv = 1.0 / math.sqrt(z_dim)   # reset_parameters(): Uniform(-stdv, stdv)
    mem = jax.random.uniform(k_mem, (mem_dim, z_dim), dtype=jnp.float32,
                             minval=-stdv, maxval=stdv)
    x = jax.random.normal(k_x, (n, z_dim), dtype=jnp.float32)

    ref = _reference_forward(x, mem, tem=tem, shrink_thres=shrink_thres)

    # f32 MXU operands: tight check (softmax approx-recip error only, mostly
    # cancelled by the exact L1 renormalization).
    blk_f32 = MemoryBlockPallas(mem, shrink_thres=shrink_thres, tem=tem,
                                matmul_dtype=jnp.float32)
    out_f32 = jax.block_until_ready(blk_f32(x))
    assert out_f32.shape == (n, z_dim)
    assert jnp.allclose(out_f32, ref, atol=2e-3, rtol=2e-2), "f32 mismatch"

    # bf16 MXU operands (v6e/v7x fast path): looser tolerance.
    blk_bf16 = MemoryBlockPallas(mem, shrink_thres=shrink_thres, tem=tem,
                                 matmul_dtype=jnp.bfloat16)
    out_bf16 = jax.block_until_ready(blk_bf16(x))
    assert out_bf16.shape == (n, z_dim)
    assert jnp.allclose(out_bf16, ref, atol=2e-2, rtol=1e-1), "bf16 mismatch"

    # Batch not a multiple of the tile: exercises the partial last block
    # (unpadded N, clipped stores) and grid > 1.
    n2 = 52
    x2 = jax.random.normal(k_x2, (n2, z_dim), dtype=jnp.float32)
    ref2 = _reference_forward(x2, mem, tem=tem, shrink_thres=shrink_thres)
    out2 = jax.block_until_ready(blk_f32(x2, tile_n=16))
    assert out2.shape == (n2, z_dim)
    assert jnp.allclose(out2, ref2, atol=2e-3, rtol=2e-2), "tiled mismatch"

    # mem_dim already a multiple of 128: exercises the no-mask path.
    mem3 = jax.random.uniform(k_mem3, (128, z_dim), dtype=jnp.float32,
                              minval=-stdv, maxval=stdv)
    x3 = jax.random.normal(k_x3, (24, z_dim), dtype=jnp.float32)
    ref3 = _reference_forward(x3, mem3, tem=tem, shrink_thres=shrink_thres)
    blk3 = MemoryBlockPallas(mem3, shrink_thres=shrink_thres, tem=tem)
    out3 = jax.block_until_ready(blk3(x3))
    assert out3.shape == (24, z_dim)
    assert jnp.allclose(out3, ref3, atol=2e-3, rtol=2e-2), "no-pad mismatch"

    print("KERNEL_OK")
</pallas_src>

<mosaic_0001>
module attributes {stable_mosaic.version = 11 : i64} {
  func.func @_memory_block_kernel(%arg0: i32, %arg1: memref<8x32xf32, #tpu.memory_space<vmem>>, %arg2: memref<32x128xf32, #tpu.memory_space<vmem>>, %arg3: memref<128x32xf32, #tpu.memory_space<vmem>>, %arg4: memref<8x32xf32, #tpu.memory_space<vmem>>) attributes {dimension_semantics = [#tpu.dimension_semantics<parallel>], iteration_bounds = array<i64: 1>, scalar_prefetch = 0 : i64, scratch_operands = 0 : i64, tpu.core_type = #tpu.core_type<tc>, window_params = [{transform_indices = @transform_0, window_bounds = array<i64: 8, 32>}, {pipeline_mode = #tpu.pipeline_mode<synchronous>, transform_indices = @transform_1, window_bounds = array<i64: 32, 128>}, {pipeline_mode = #tpu.pipeline_mode<synchronous>, transform_indices = @transform_2, window_bounds = array<i64: 128, 32>}, {transform_indices = @transform_3, window_bounds = array<i64: 8, 32>}]} {
    %c0 = arith.constant 0 : index
    %c0_0 = arith.constant 0 : index
    %0 = vector.load %arg1[%c0, %c0_0] : memref<8x32xf32, #tpu.memory_space<vmem>>, vector<8x32xf32>
    %c0_1 = arith.constant 0 : index
    %c0_2 = arith.constant 0 : index
    %1 = vector.load %arg2[%c0_1, %c0_2] : memref<32x128xf32, #tpu.memory_space<vmem>>, vector<32x128xf32>
    %c0_3 = arith.constant 0 : index
    %c0_4 = arith.constant 0 : index
    %2 = vector.load %arg3[%c0_3, %c0_4] : memref<128x32xf32, #tpu.memory_space<vmem>>, vector<128x32xf32>
    %cst = arith.constant dense<0.000000e+00> : vector<8x128xf32>
    %3 = tpu.matmul %0, %1, %cst {dimension_numbers = #tpu.dot_dimension_numbers<[1], [0], [0], [1], [0, 0, 1, 1], [], []>} : vector<8x32xf32>, vector<32x128xf32>, vector<8x128xf32> -> vector<8x128xf32>
    %4 = tpu.iota {dimensions = array<i32: 1>} : vector<8x128xi32>
    %c64_i32 = arith.constant 64 : i32
    %5 = vector.broadcast %c64_i32 : i32 to vector<8x128xi32>
    %6 = arith.cmpi slt, %4, %5 : vector<8x128xi32>
    %cst_5 = arith.constant 0xFF800000 : f32
    %7 = vector.broadcast %cst_5 : f32 to vector<8x128xf32>
    %8 = arith.select %6, %3, %7 : vector<8x128xi1>, vector<8x128xf32>
    %cst_6 = arith.constant dense<0xFF800000> : vector<8xf32>
    %9 = vector.multi_reduction <maximumf>, %8, %cst_6 [1] : vector<8x128xf32> to vector<8xf32>
    %10 = vector.shape_cast %9 : vector<8xf32> to vector<8x1xf32>
    %11 = vector.broadcast %10 : vector<8x1xf32> to vector<8x128xf32>
    %12 = arith.subf %8, %11 : vector<8x128xf32>
    %13 = math.exp %12 : vector<8x128xf32>
    %cst_7 = arith.constant dense<0.000000e+00> : vector<8xf32>
    %14 = vector.multi_reduction <add>, %13, %cst_7 [1] : vector<8x128xf32> to vector<8xf32>
    %15 = vector.shape_cast %14 : vector<8xf32> to vector<8x1xf32>
    %16 = tpu.reciprocal %15 {approx = true} : vector<8x1xf32> -> vector<8x1xf32>
    %17 = vector.broadcast %16 : vector<8x1xf32> to vector<8x128xf32>
    %18 = arith.mulf %13, %17 : vector<8x128xf32>
    %cst_8 = arith.constant 5.000000e-03 : f32
    %19 = vector.broadcast %cst_8 : f32 to vector<8x128xf32>
    %20 = arith.subf %18, %19 : vector<8x128xf32>
    %cst_9 = arith.constant 0.000000e+00 : f32
    %21 = vector.broadcast %cst_9 : f32 to vector<8x128xf32>
    %22 = arith.maximumf %20, %21 : vector<8x128xf32>
    %23 = arith.mulf %18, %22 : vector<8x128xf32>
    %cst_10 = arith.constant 9.99999996E-13 : f32
    %24 = vector.broadcast %cst_10 : f32 to vector<8x128xf32>
    %25 = arith.addf %22, %24 : vector<8x128xf32>
    %26 = arith.divf %23, %25 : vector<8x128xf32>
    %cst_11 = arith.constant dense<0.000000e+00> : vector<8xf32>
    %27 = vector.multi_reduction <add>, %26, %cst_11 [1] : vector<8x128xf32> to vector<8xf32>
    %28 = vector.shape_cast %27 : vector<8xf32> to vector<8x1xf32>
    %cst_12 = arith.constant 9.99999996E-13 : f32
    %29 = vector.broadcast %cst_12 : f32 to vector<8x1xf32>
    %30 = arith.maximumf %28, %29 : vector<8x1xf32>
    %31 = vector.broadcast %30 : vector<8x1xf32> to vector<8x128xf32>
    %32 = arith.divf %26, %31 : vector<8x128xf32>
    %cst_13 = arith.constant dense<0.000000e+00> : vector<8x32xf32>
    %33 = tpu.matmul %32, %2, %cst_13 {dimension_numbers = #tpu.dot_dimension_numbers<[1], [0], [0], [1], [0, 0, 1, 1], [], []>} : vector<8x128xf32>, vector<128x32xf32>, vector<8x32xf32> -> vector<8x32xf32>
    %c0_14 = arith.constant 0 : index
    %c0_15 = arith.constant 0 : index
    %34 = vector.load %arg4[%c0_14, %c0_15] : memref<8x32xf32, #tpu.memory_space<vmem>>, vector<8x32xf32>
    tpu.vector_store %arg4[%c0_14, %c0_15], %33 {strides = array<i32>} : memref<8x32xf32, #tpu.memory_space<vmem>>, vector<8x32xf32>,
    return
  }
  func.func @transform_0(%arg0: i32) -> (i32, i32) {
    %c0_i32 = arith.constant 0 : i32
    %c0_i32_0 = arith.constant 0 : i32
    return %arg0, %c0_i32 : i32, i32
  }
  func.func @transform_1(%arg0: i32) -> (i32, i32) {
    %c0_i32 = arith.constant 0 : i32
    %c0_i32_0 = arith.constant 0 : i32
    %c0_i32_1 = arith.constant 0 : i32
    return %c0_i32, %c0_i32_0 : i32, i32
  }
  func.func @transform_2(%arg0: i32) -> (i32, i32) {
    %c0_i32 = arith.constant 0 : i32
    %c0_i32_0 = arith.constant 0 : i32
    %c0_i32_1 = arith.constant 0 : i32
    return %c0_i32, %c0_i32_0 : i32, i32
  }
  func.func @transform_3(%arg0: i32) -> (i32, i32) {
    %c0_i32 = arith.constant 0 : i32
    %c0_i32_0 = arith.constant 0 : i32
    return %arg0, %c0_i32 : i32, i32
  }
}

</mosaic_0001>

<bundles_post_ra>
// kernel: tpu_custom_call.1
= control target key start
LH: loop header
LB: loop body
LE: loop exit
PB: predicated region body
PF: predicated region fallthrough
CT: control target
= control target key end

     0   :  { %v355_v3 = vmov 0.0|0.0   ;;  %vm356_vm0 = vmmov 0   ;;  %v357_v6 = vmov 0.0   ;;  %s466_s0 = inlined_call_operand.vmem [shape: f32[8,32], index: 0, kind: input, shape index: {}]   ;;  %s467_s1 = inlined_call_operand.vmem [shape: f32[32,128], index: 1, kind: input, shape index: {}]   ;;  %s468_s2 = inlined_call_operand.vmem [shape: f32[128,32], index: 2, kind: input, shape index: {}]   ;;  %s469_s3 = inlined_call_operand.hbm [shape: f32[8,32], index: 3, kind: output, shape index: {}]  }
   0x1   :  { %v16_v0 = vld [vmem:[%s467_s1] sm:$0xff]  ;;  %v17_v1 = vld [vmem:[%s467_s1 + $0x8] sm:$0xff]  ;;  %v18_v2 = vld [vmem:[%s467_s1 + $0x10] sm:$0xff]  ;;  %289 = vmatprep.subr.bf16.mxu0 %v355_v3  ;;  %251 = vmatprep.mubr.msk.f32.mxu0 %vm356_vm0, %v357_v6 }
   0x2   :  { %v290_v4 = vpack.c.bf16 %v17_v1, %v16_v0  ;;  %v19_v5 = vld [vmem:[%s467_s1 + $0x18] sm:$0xff] }
   0x3   :  { %8 = vsyncpa [#allocation3], 0  ;;  %295 = vmatprep.subr.bf16.mxu1 %v355_v3  ;;  %286 = vmatprep.mubr.msk.f32.mxu1 %vm356_vm0, %v357_v6  ;;  %v293_v7 = vpack.c.bf16 %v19_v5, %v18_v2  ;;  %v15_v8 = vld [vmem:[%s466_s0] sm:$0xff]  ;;  %vm36_vm1 = vcmask 261120   ;;  %v110_v9 = vlaneseq  ;;  %v21_v19 = vld [vmem:[%s468_s2 + $0x8] sm:$0xff]  ;;  %s358_s23 = smov [#allocation2]  }
   0x4   :  { %291 = vmatpush3.bf16.msra.mxu0 %v290_v4  ;;  %v20_v18 = vld [vmem:[%s468_s2] sm:$0xff]  ;;  %v22_v20 = vld [vmem:[%s468_s2 + $0x10] sm:$0xff]  ;;  %v23_v22 = vld [vmem:[%s468_s2 + $0x18] sm:$0xff]  ;;  %s211_s24 = sshll.u32 %s358_s23, 4  ;;  %s212_s24 = int_to_ptr.vmem [resolvable:$true] %s211_s24 }
   0x5   :  { %292 = vmatprep.subr.bf16.mxu0 %v355_v3  ;;  %v111_v10 = vand.u32 127, %v110_v9  ;;  %v296_v21 = vpack.c.bf16 %v21_v19, %v20_v18  ;;  %v299_v23 = vpack.c.bf16 %v23_v22, %v22_v20  ;;  %v24_v24 = vld [vmem:[%s468_s2 + $0x20] sm:$0xff]  ;;  %v25_v25 = vld [vmem:[%s468_s2 + $0x28] sm:$0xff]  ;;  %v26_v27 = vld [vmem:[%s468_s2 + $0x30] sm:$0xff]  ;;  %s331_s25 = scalar_lea.vmem %s212_s24, 128  ;;  %p336_p1 = scmp.lt.s32.totalorder %s212_s24, %s212_s24 }
   0x6   :  { %v302_v26 = vpack.c.bf16 %v25_v25, %v24_v24  ;;  %v27_v28 = vld [vmem:[%s468_s2 + $0x38] sm:$0xff]  ;;  %v28_v39 = vld [vmem:[%s468_s2 + $0x40] sm:$0xff]  ;;  %v29_v40 = vld [vmem:[%s468_s2 + $0x48] sm:$0xff]  ;;  %p332_p0 = scmp.ne.s32.totalorder %s212_s24, %s331_s25  ;;  %p337_p2 = scmp.lt.s32.totalorder %s331_s25, %s331_s25 }
   0x7   :  { %vm112_vm2 = vcmp.lt.s32.totalorder %v111_v10, 64  ;;  %297 = vmatpush3.bf16.msra.mxu1 %v296_v21  ;;  %v305_v29 = vpack.c.bf16 %v27_v28, %v26_v27  ;;  %v308_v41 = vpack.c.bf16 %v29_v40, %v28_v39  ;;  %v30_v42 = vld [vmem:[%s468_s2 + $0x50] sm:$0xff]  ;;  %v31_v43 = vld [vmem:[%s468_s2 + $0x58] sm:$0xff]  ;;  %v32_v45 = vld [vmem:[%s468_s2 + $0x60] sm:$0xff] }
   0x8   :  { %294 = vmatpush3.bf16.msra.mxu0 %v293_v7  ;;  %298 = vmatprep.subr.bf16.mxu1 %v355_v3  ;;  %v311_v44 = vpack.c.bf16 %v31_v43, %v30_v42  ;;  %v33_v46 = vld [vmem:[%s468_s2 + $0x68] sm:$0xff]  ;;  %v34_v48 = vld [vmem:[%s468_s2 + $0x70] sm:$0xff]  ;;  %v35_v49 = vld [vmem:[%s468_s2 + $0x78] sm:$0xff]  ;;  %p338_p3 = por %p337_p2, %p336_p1 }
   0x9   :  { %v314_v47 = vpack.c.bf16 %v33_v46, %v32_v45  ;;  %v317_v50 = vpack.c.bf16 %v35_v49, %v34_v48 }
   0xa   :  { %p339_p4 = pnand %p338_p3, %p332_p0 }
   0xb   :  { %252 = vmatmul.mubr.msk.f32.vlgmr.msra.gmra.mrb[0].mxu0 %vm36_vm1, %v15_v8  ;;  %300 = vmatpush3.bf16.msra.mxu1 %v299_v23 }
   0xc   :  { %301 = vmatprep.subr.bf16.mxu1 %v355_v3 }
   0xf   :  { %303 = vmatpush3.bf16.msra.mxu1 %v302_v26 }
  0x10   :  { %304 = vmatprep.subr.bf16.mxu1 %v355_v3 }
  0x13   :  { %306 = vmatpush3.bf16.msra.mxu1 %v305_v29 }
  0x14   :  { %307 = vmatprep.subr.bf16.mxu1 %v355_v3 }
  0x17   :  { %309 = vmatpush3.bf16.msra.mxu1 %v308_v41 }
  0x18   :  { %310 = vmatprep.subr.bf16.mxu1 %v355_v3 }
  0x1b   :  { %312 = vmatpush3.bf16.msra.mxu1 %v311_v44 }
  0x1c   :  { %313 = vmatprep.subr.bf16.mxu1 %v355_v3 }
  0x1f   :  { %315 = vmatpush3.bf16.msra.mxu1 %v314_v47 }
  0x20   :  { %316 = vmatprep.subr.bf16.mxu1 %v355_v3 }
  0x23   :  { %318 = vmatpush3.bf16.msra.mxu1 %v317_v50 }
  0xde   :  { %v106_v11 = vpop.f32.mrb[0].mxu0 }
  0xdf   :  { %v253_v12 = vpop.f32.mrb[1].mxu0  ;;  %v113_v13 = vsel %vm112_vm2, %v106_v11, -inf }
  0xe0   :  { %114 = vmax.xlane.f32.xlu0 %v113_v13 }
 0x16d   :  { %v115_v14 = vpop.xlane.xlu0 %114 }
 0x16e   :  { %v116_v15 = vsub.f32 %v113_v13, %v115_v14 }
 0x170   :  { %v117_v16 = vmul.f32 1.442695, %v116_v15 }
 0x172   :  { %323 = vpow2.f32 %v117_v16 }
 0x17c   :  { %v324_v17 = vpop.eup %323 }
 0x17d   :  { %119 = vadd.xlane.f32.xlu0 %v324_v17 }
 0x20a   :  { %v120_v30 = vpop.xlane.xlu0 %119 }
 0x20b   :  { %325 = vrcp.f32 %v120_v30 }
 0x215   :  { %v326_v31 = vpop.eup %325 }
 0x216   :  { %v122_v32 = vmul.f32 %v326_v31, %v324_v17 }
 0x218   :  { %v220_v33 = vadd.f32 -0.005, %v122_v32 }
 0x21a   :  { %v124_v34 = vmax.f32 %v220_v33, 0.0 }
 0x21c   :  { %v126_v35 = vadd.f32 1e-12, %v124_v34  ;;  %v125_v36 = vmul.f32 %v124_v34, %v122_v32 }
 0x21e   :  { %327 = vrcp.f32 %v126_v35 }
 0x228   :  { %v328_v37 = vpop.eup %327 }
 0x229   :  { %v128_v38 = vmul.f32 %v328_v37, %v125_v36 }
 0x22b   :  { %129 = vadd.xlane.f32.xlu1 %v128_v38 }
 0x2b8   :  { %v130_v51 = vpop.xlane.xlu1 %129 }
 0x2b9   :  { %v131_v52 = vmax.f32 %v130_v51, 1e-12 }
 0x2bb   :  { %329 = vrcp.f32 %v131_v52 }
 0x2c5   :  { %v330_v53 = vpop.eup %329 }
 0x2c6   :  { %v133_v54 = vmul.f32 %v330_v53, %v128_v38 }
 0x2c8   :  { %287 = vmatmul.mubr.f32.vlgmr.msra.gmra.mrb[0].mxu1 %v133_v54 }
 0x39b   :  { %v200_v55 = vpop.f32.mrb[0].mxu1 }
 0x39c   :  { %204 = vst.msk [vmem:[#allocation2] sm:$0xff] %vm36_vm1, %v200_v55  ;;  %v288_v56 = vpop.f32.mrb[1].mxu1 }
 0x39d   :  { %342 = shalt.err (!%p339_p4)
}
 0x39e   :  { %s343_s27 = scalar_lea.hbm %s469_s3, 128 }
 0x39f   :  { %p344_p5 = scmp.ne.s32.totalorder %s469_s3, %s343_s27  ;;  %p347_p6 = scmp.lt.u32.totalorder %s343_s27, %s469_s3 }
 0x3a1   :  { %p349_p7 = pnand %p347_p6, %p344_p5 }
 0x3a3   :  { %352 = shalt.err (!%p349_p7)
}
 0x3a4   :  { %214 = dma.vmem_to_hbm [thread:$0]  %s212_s24, 128, %s469_s3, [#allocation3]  }
 0x3a5   :  { %353 = dma.done.wait [#allocation3], 128  }
 0x3a6   :  { %354 = vsyncadd [#allocation3], 4294967168 }
 0x3a7   :  { %218 = vsyncpa [#allocation3], 1 }

</bundles_post_ra>
